<compile_context>
chip_gen: v5e
topology: v5e:2x2
jax: 0.10.0
libtpu: 0.0.40
codegen_flags: <defaults>
</compile_context>

<pallas_src>
import functools

import jax
import jax.numpy as jnp
from jax.experimental import pallas as pl
from jax.experimental.pallas import tpu as pltpu


def _lrn_kernel(x_ref, o_ref, xpad_ref, *, local_size, pad, scale, beta, k):
    """Process one (1, C, TILE_HW) spatial tile of one batch element.

    xpad_ref: (C + local_size - 1, TILE_HW) f32 scratch holding x^2 with a zero
    halo of `pad` rows on top and `local_size - 1 - pad` rows below, so the
    cross-channel window sum is `local_size` static sublane-offset loads + adds
    (pure VPU / load-store work, no MXU).
    """
    C = x_ref.shape[1]
    tile = x_ref.shape[2]

    xf = x_ref[0].astype(jnp.float32)                     # (C, TILE) in f32
    x2 = xf * xf

    if local_size == 1:
        s = x2
    else:
        tail = local_size - 1 - pad
        if pad > 0:
            xpad_ref[pl.ds(0, pad), :] = jnp.zeros((pad, tile), jnp.float32)
        if tail > 0:
            xpad_ref[pl.ds(pad + C, tail), :] = jnp.zeros((tail, tile), jnp.float32)
        xpad_ref[pl.ds(pad, C), :] = x2
        s = xpad_ref[pl.ds(0, C), :]
        for i in range(1, local_size):                    # static, small unroll
            s = s + xpad_ref[pl.ds(i, C), :]

    # div = (s*alpha/local_size + k)^beta ; out = x / div = x * exp(-beta*log(.))
    # Argument of log is > 0 whenever k > 0 (sum of squares >= 0).
    div_inv = jnp.exp(-beta * jnp.log(s * scale + k))
    # Re-read x_ref instead of keeping xf live across the window sum.
    o_ref[0] = (x_ref[0].astype(jnp.float32) * div_inv).astype(o_ref.dtype)


def _tile_params():
    """Generation-aware (max_tile_lanes, vmem_limit_bytes)."""
    try:
        vmem_bytes = int(pltpu.get_tpu_info().vmem_capacity_bytes)
    except Exception:
        vmem_bytes = 64 * 1024 * 1024
    if vmem_bytes >= 128 * 1024 * 1024:        # v5e / v6e: 128 MiB physical VMEM
        return 4096, 64 * 1024 * 1024
    return 2048, 32 * 1024 * 1024              # v7x (64 MiB) or unknown: stay safe


def spatial_cross_map_lrn(x, local_size=1, alpha=1.0, beta=0.75, k=1.0):
    """Across-channel LRN matching SpatialCrossMapLRN(ACROSS_CHANNELS=True)."""
    # TODO(synk): ACROSS_CHANNELS=False (within-channel AvgPool2d) path not implemented.
    N, C, H, W = x.shape
    HW = H * W
    pad = int((local_size - 1.0) / 2)

    max_tile_hw, vmem_limit = _tile_params()

    if HW <= 128:
        tile_hw = HW                           # block == full dim (always legal)
    else:
        lane_units = pl.cdiv(HW, 128)          # spatial extent in 128-lane units
        units = min(max_tile_hw // 128, lane_units)
        # Keep enough grid steps for DMA/compute overlap and megacore sharding.
        min_steps = 8
        while units > 1 and N * pl.cdiv(lane_units, units) < min_steps:
            units = (units + 1) // 2
        tile_hw = units * 128
    n_hw_tiles = pl.cdiv(HW, tile_hw)

    x2d = x.reshape(N, C, HW)                  # merges trailing dims: no data movement

    kernel = functools.partial(
        _lrn_kernel,
        local_size=int(local_size),
        pad=pad,
        scale=float(alpha) / float(local_size),
        beta=float(beta),
        k=float(k),
    )

    elems = N * C * HW
    cost = pl.CostEstimate(
        flops=elems * (int(local_size) + 4),
        transcendentals=2 * elems,
        bytes_accessed=2 * elems * x.dtype.itemsize,
    )

    out = pl.pallas_call(
        kernel,
        out_shape=jax.ShapeDtypeStruct((N, C, HW), x.dtype),
        grid=(N, n_hw_tiles),
        in_specs=[pl.BlockSpec((1, C, tile_hw), lambda n, j: (n, 0, j))],
        out_specs=pl.BlockSpec((1, C, tile_hw), lambda n, j: (n, 0, j)),
        scratch_shapes=[pltpu.VMEM((C + int(local_size) - 1, tile_hw), jnp.float32)],
        compiler_params=pltpu.CompilerParams(
            dimension_semantics=("parallel", "parallel"),
            vmem_limit_bytes=vmem_limit,
        ),
        cost_estimate=cost,
    )(x2d)

    return out.reshape(N, C, H, W)


def _lrn_reference(x, local_size=1, alpha=1.0, beta=0.75, k=1.0):
    """Plain-JAX reference mirroring the PyTorch forward."""
    N, C, H, W = x.shape
    pad = int((local_size - 1.0) / 2)
    x2 = x * x
    x2p = jnp.pad(x2, ((0, 0), (pad, pad), (0, 0), (0, 0)))
    s = jnp.zeros_like(x)
    for i in range(local_size):
        s = s + x2p[:, i:i + C, :, :]
    div = (s / float(local_size)) * alpha + k
    div = jnp.power(div, beta)
    return x / div


if __name__ == "__main__":
    key = jax.random.PRNGKey(0)
    x = jax.random.normal(key, (2, 4, 16, 16), dtype=jnp.float32)

    # Config 1: module defaults (local_size=1, alpha=1.0, beta=0.75, k=1)
    out_default = spatial_cross_map_lrn(x, local_size=1, alpha=1.0, beta=0.75, k=1.0)
    out_default = jax.block_until_ready(out_default)
    ref_default = _lrn_reference(x, local_size=1, alpha=1.0, beta=0.75, k=1.0)
    assert jnp.allclose(out_default, ref_default, rtol=1e-5, atol=1e-5)

    # Config 2: typical VGG-M LRN hyper-parameters (non-trivial channel window)
    out_vggm = spatial_cross_map_lrn(x, local_size=5, alpha=1e-4, beta=0.75, k=2.0)
    out_vggm = jax.block_until_ready(out_vggm)
    ref_vggm = _lrn_reference(x, local_size=5, alpha=1e-4, beta=0.75, k=2.0)
    assert jnp.allclose(out_vggm, ref_vggm, rtol=1e-5, atol=1e-5)

    print("KERNEL_OK")
</pallas_src>

<mosaic_0001>
module attributes {stable_mosaic.version = 11 : i64} {
  func.func @_lrn_kernel(%arg0: i32, %arg1: i32, %arg2: memref<1x4x128xf32, #tpu.memory_space<vmem>>, %arg3: memref<1x4x128xf32, #tpu.memory_space<vmem>>, %arg4: memref<4x128xf32, #tpu.memory_space<vmem>>) attributes {dimension_semantics = [#tpu.dimension_semantics<parallel>, #tpu.dimension_semantics<parallel>], iteration_bounds = array<i64: 2, 2>, scalar_prefetch = 0 : i64, scratch_operands = 1 : i64, tpu.core_type = #tpu.core_type<tc>, window_params = [{transform_indices = @transform_0, window_bounds = array<i64: 1, 4, 128>}, {transform_indices = @transform_1, window_bounds = array<i64: 1, 4, 128>}]} {
    %c0 = arith.constant 0 : index
    %c0_0 = arith.constant 0 : index
    %c0_1 = arith.constant 0 : index
    %0 = vector.load %arg2[%c0, %c0_0, %c0_1] : memref<1x4x128xf32, #tpu.memory_space<vmem>>, vector<1x4x128xf32>
    %1 = vector.shape_cast %0 : vector<1x4x128xf32> to vector<4x128xf32>
    %2 = arith.mulf %1, %1 : vector<4x128xf32>
    %cst = arith.constant 1.000000e+00 : f32
    %3 = vector.broadcast %cst : f32 to vector<4x128xf32>
    %4 = arith.mulf %2, %3 : vector<4x128xf32>
    %cst_2 = arith.constant 1.000000e+00 : f32
    %5 = vector.broadcast %cst_2 : f32 to vector<4x128xf32>
    %6 = arith.addf %4, %5 : vector<4x128xf32>
    %7 = math.log %6 : vector<4x128xf32>
    %cst_3 = arith.constant -7.500000e-01 : f32
    %8 = vector.broadcast %cst_3 : f32 to vector<4x128xf32>
    %9 = arith.mulf %8, %7 : vector<4x128xf32>
    %10 = math.exp %9 : vector<4x128xf32>
    %c0_4 = arith.constant 0 : index
    %c0_5 = arith.constant 0 : index
    %c0_6 = arith.constant 0 : index
    %11 = vector.load %arg2[%c0_4, %c0_5, %c0_6] : memref<1x4x128xf32, #tpu.memory_space<vmem>>, vector<1x4x128xf32>
    %12 = vector.shape_cast %11 : vector<1x4x128xf32> to vector<4x128xf32>
    %13 = arith.mulf %12, %10 : vector<4x128xf32>
    %c0_7 = arith.constant 0 : index
    %c0_8 = arith.constant 0 : index
    %c0_9 = arith.constant 0 : index
    %14 = vector.load %arg3[%c0_7, %c0_8, %c0_9] : memref<1x4x128xf32, #tpu.memory_space<vmem>>, vector<1x4x128xf32>
    %15 = vector.shape_cast %14 : vector<1x4x128xf32> to vector<4x128xf32>
    %16 = vector.shape_cast %13 : vector<4x128xf32> to vector<1x4x128xf32>
    tpu.vector_store %arg3[%c0_7, %c0_8, %c0_9], %16 {strides = array<i32>} : memref<1x4x128xf32, #tpu.memory_space<vmem>>, vector<1x4x128xf32>,
    return
  }
  func.func @transform_0(%arg0: i32, %arg1: i32) -> (i32, i32, i32) {
    %c0_i32 = arith.constant 0 : i32
    %c0_i32_0 = arith.constant 0 : i32
    return %arg0, %c0_i32, %arg1 : i32, i32, i32
  }
  func.func @transform_1(%arg0: i32, %arg1: i32) -> (i32, i32, i32) {
    %c0_i32 = arith.constant 0 : i32
    %c0_i32_0 = arith.constant 0 : i32
    return %arg0, %c0_i32, %arg1 : i32, i32, i32
  }
}

</mosaic_0001>

<bundles_post_ra>
// kernel: tpu_custom_call.1
= control target key start
LH: loop header
LB: loop body
LE: loop exit
PB: predicated region body
PF: predicated region fallthrough
CT: control target
= control target key end

     0   :  { %6 = vsyncpa [#allocation4], 0  ;;  %s644_s0 = inlined_call_operand.hbm [shape: f32[2,4,256], index: 0, kind: input, shape index: {}]   ;;  %s645_s1 = inlined_call_operand.hbm [shape: f32[2,4,256], index: 1, kind: output, shape index: {}]  }
   0x1   :  { %8 = vsyncpa [#allocation4 + $0x1], 0 }
   0x2   :  { %9 = vsyncpa [#allocation5], 0 }
   0x3   :  { %11 = vsyncpa [#allocation5 + $0x1], 0  ;;  %s502_s6 = smov 0   ;;  %s504_s7 = smov 0  }
   0x4   :  { %s506_s8 = smov 0   ;;  %s508_s9 = smov 0  }
   0x5   :  { %s510_s10 = smov 0   ;;  %s512_s11 = smov 0  }
   0x6   :  { %s514_s12 = smov 0   ;;  %s516_s13 = smov 0  }
   0x7 LB: > { %s265_s14 = sadd.s32 4294967295, %s490_s13   ;;  %s266_s15 = sadd.s32 4294967294, %s490_s13   ;;  %s490_s13 = sphi %s516_s13, %s17_s13   ;;  %s486_s12 = sphi %s514_s12, %s656_s12   ;;  %s482_s11 = sphi %s512_s11, %s655_s11   ;;  %s478_s10 = sphi %s510_s10, %s654_s10   ;;  %s474_s9 = sphi %s508_s9, %s653_s9   ;;  %s470_s8 = sphi %s506_s8, %s652_s8   ;;  %s466_s7 = sphi %s504_s7, %s651_s7   ;;  %s462_s6 = sphi %s502_s6, %s650_s6  }
   0x8   : > { %s26_s16 = sadd.s32 1, %s482_s11  ;;  %s29_s17 = sadd.s32 1, %s486_s12 }
   0x9   : > { %p27_p0 = scmp.ge.s32.totalorder %s26_s16, 2  ;;  %s38_s18 = sadd.s32 1, %s470_s8 }
   0xa   : > { %p45_p1 = scmp.ne.s32.totalorder %s470_s8, %s466_s7  ;;  %p46_p2 = scmp.eq.s32.totalorder %s490_s13, 0 }
   0xb   : > { %s658_s16 = smov (%p27_p0, %s26_s16), 0  ;;  %s660_s17 = smov (!%p27_p0, %s29_s17), %s486_s12 }
   0xc   : > { %s34_s19 = ssub.s32 %s482_s11, %s658_s16  ;;  %p555_p3 = por %p46_p2, %p45_p1 }
   0xd   : > { %p31_p4 = scmp.ge.s32.totalorder %s660_s17, 2  ;;  %p51_p5 = scmp.ne.s32.totalorder %s466_s7, %s462_s6 }
   0xe   : > { %p52_p6 = scmp.eq.s32.totalorder %s265_s14, 0  ;;  %p77_p7 = scmp.eq.s32.totalorder %s265_s14, 3 }
   0xf   : > { %s662_s17 = smov (%p31_p4, %s660_s17), 0  ;;  %p83_p10 = scmp.eq.s32.totalorder %s266_s15, 3 }
  0x10   : > { %p563_p8 = por %p52_p6, %p51_p5  ;;  %p567_p9 = por %p77_p7, %p45_p1 }
  0x11   : > { %s33_s23 = ssub.s32 %s486_s12, %s662_s17  ;;  %p573_p12 = por %p83_p10, %p51_p5 }
  0x12   : > { %s35_s24 = sor.u32 %s34_s19, %s33_s23  ;;  %p292_p13 = scmp.lt.s32.totalorder %s490_s13, 4 }
  0x13   : > { %p36_p11 = scmp.eq.s32.totalorder %s35_s24, 0  ;;  %s103_s26 = sand.u32 1, %s470_s8  }
  0x14   : > { %s269_s28 = sshll.u32 %s103_s26, 2  ;;  %s270_s29 = sshll.u32 %s486_s12, 1 }
  0x15   : > { %s580_s27 = scalar_select %p36_p11, %s470_s8, %s38_s18  }
  0x16   : > { %s111_s30 = sadd.s32 %s482_s11, %s270_s29  ;;  %s107_s2 = scalar_lea.vmem [#allocation3], %s269_s28 }
  0x17   : > { %s117_s3 = sshll.u32 %s107_s2, 4  ;;  %s271_s4 = sshll.u32 %s111_s30, 2  ;;  %s118_s3 = int_to_ptr.vmem [resolvable:$true] %s117_s3 }
  0x18   : > { %s113_s15 = scalar_lea.hbm %s644_s0, %s271_s4  ;;  %p285_p0 = pnand %p292_p13, %p555_p3 }
  0x19   : > { %s115_s19 = sshll.u32 %s113_s15, 4  ;;  %p272_p1 = scmp.ge.s32.totalorder %s490_s13, 1  ;;  %s116_s19 = int_to_ptr.hbm [resolvable:$true] %s115_s19 }
  0x1a   : > { %s104_s23 = scalar_lea.sflag [#allocation4], %s103_s26  ;;  %p122_p2 = scmp.lt.s32.totalorder %s490_s13, 5 }
  0x1b   : > { %287 = dma.hbm_to_vmem [thread:$0]  (!%p285_p0), %s116_s19, 64, %s118_s3, %s104_s23  }
  0x1c   : > { %p123_p4 = pnand %p272_p1, %p122_p2 }
  0x1d   : > { %s592_s18 = sand.u32 (!%p123_p4), 1, %s466_s7  }
  0x1e   : > { %126 = sbr.rel (%p123_p4) target bundleno = 66 (0x42), region = 24  ;;  %s273_s24 = sshll.u32 (!%p123_p4), %s592_s18, 2 }
  0x1f   : > { %s129_s28 = scalar_lea.sflag (!%p123_p4), [#allocation4], %s592_s18  ;;  %s132_s29 = scalar_lea.vmem (!%p123_p4), [#allocation3], %s273_s24 }
  0x23   : > { %453 = dma.done.wait (%p563_p8), %s129_s28, 64  }
  0x24   : > { %455 = vsyncadd (%p563_p8), %s129_s28, 4294967232  ;;  %v152_v0 = vld [vmem:[%s132_s29] sm:$0xf]  ;;  %s276_s20 = sshll.u32 %s478_s10, 1  ;;  %s151_s4 = scalar_lea.vmem [#allocation6], %s273_s24 }
  0x25   : > { %v153_v1 = vmul.f32 %v152_v0, %v152_v0  ;;  %s173_s26 = sadd.s32 %s474_s9, %s276_s20  ;;  %s177_s5 = sshll.u32 %s151_s4, 4  ;;  %s178_s5 = int_to_ptr.vmem [resolvable:$true] %s177_s5 }
  0x26   : > { %s277_s30 = sshll.u32 %s173_s26, 2  ;;  %s163_s10 = scalar_lea.sflag [#allocation5], %s592_s18 }
  0x27   : > { %v154_v2 = vadd.f32 1.0, %v153_v1  ;;  %s175_s21 = scalar_lea.hbm %s645_s1, %s277_s30  ;;  %s412_s28 = scalar_lea.hbm %s645_s1, 16 }
  0x28   : > { %s179_s14 = sshll.u32 %s175_s21, 4  ;;  %s180_s14 = int_to_ptr.hbm [resolvable:$true] %s179_s14 }
  0x29   : > { %358 = vlog2.f32 %v154_v2  ;;  %s406_s15 = sshra.s32 %s180_s14, 4  ;;  %s407_s15 = int_to_ptr.hbm [resolvable:$true] %s406_s15 }
  0x2a   : > { %s408_s9 = scalar_lea.hbm %s407_s15, 4  ;;  %p413_p7 = scmp.lt.s32.totalorder %s407_s15, %s645_s1 }
  0x2b   : > { %p409_p3 = scmp.ne.s32.totalorder %s407_s15, %s408_s9  ;;  %p414_p8 = scmp.lt.s32.totalorder %s412_s28, %s408_s9 }
  0x2d   : > { %p410_p5 = pnand %p409_p3, %p567_p9  ;;  %p415_p10 = por %p414_p8, %p413_p7 }
  0x2f   : > { %v359_v3 = vpop.eup %358  ;;  %p411_p6 = pneg %p410_p5 }
  0x30   : > { %v156_v4 = vmul.f32 0.6931472, %v359_v3 }
  0x31   : > { %p416_p11 = pnand %p415_p10, %p411_p6 }
  0x32   : > { %v157_v5 = vmul.f32 -0.75, %v156_v4 }
  0x34   : > { %v158_v6 = vmul.f32 1.442695, %v157_v5 }
  0x36   : > { %360 = vpow2.f32 %v158_v6 }
  0x3c   : > { %v361_v7 = vpop.eup %360 }
  0x3d   : > { %v160_v8 = vmul.f32 %v361_v7, %v152_v0 }
  0x3f   : > { %161 = vst [vmem:[%s151_s4] sm:$0xf] %v160_v8 }
  0x40   : > { %419 = shalt.err (!%p416_p11)
}
  0x41   : > { %282 = dma.vmem_to_hbm [thread:$0]  (%p567_p9), %s178_s5, 64, %s180_s14, %s163_s10  }
  0x42 PF: > { %p293_p13 = scmp.ge.s32.totalorder %s490_s13, 2  ;;  %s191_s18 = sand.u32 1, %s462_s6  }
  0x43   : > { %s192_s20 = scalar_lea.sflag [#allocation5], %s191_s18 }
  0x44   : > { %p289_p0 = pnand %p293_p13, %p573_p12 }
  0x46   : > { %p290_p1 = pneg %p289_p0 }
  0x48   : > { %457 = dma.done.wait (%p290_p1), %s192_s20, 64  }
  0x49   : > { %459 = vsyncadd (%p290_p1), %s192_s20, 4294967232  ;;  %s17_s13 = sadd.s32 1, %s490_s13   ;;  %s650_s6 = smov %s466_s7 }
  0x4a   : > { %p14_p2 = scmp.ge.s32.totalorder %s17_s13, 6   ;;  %s651_s7 = smov %s470_s8 }
  0x4b   : > { %s652_s8 = smov %s580_s27  ;;  %s653_s9 = smov %s482_s11 }
  0x4c   : > { %s654_s10 = smov %s486_s12  ;;  %s655_s11 = smov %s658_s16 }
  0x4d   : > { %s656_s12 = smov %s662_s17  ;;  %16 = sbr.rel (!%p14_p2) target bundleno = 7 (0x7), region = 69 }
  0x52   :  { %198 = vsyncpa [#allocation4], 1 }
  0x53   :  { %200 = vsyncpa [#allocation4 + $0x1], 1 }
  0x54   :  { %201 = vsyncpa [#allocation5], 1 }
  0x55   :  { %203 = vsyncpa [#allocation5 + $0x1], 1 }

</bundles_post_ra>
